<compile_context>
chip_gen: v7x
topology: tpu7x:2x2x1
jax: 0.10.0
libtpu: 0.0.40
codegen_flags: <defaults>
</compile_context>

<pallas_src>
import jax
import jax.numpy as jnp
from jax.experimental import pallas as pl
from jax.experimental.pallas import tpu as pltpu


def _round_up(v: int, m: int) -> int:
    return ((v + m - 1) // m) * m


def _mlp_kernel_fused(x_ref, w1_ref, b1_ref, w2_ref, b2_ref, o_ref):
    # x_ref : (tm, E)   row tile of tokens
    # w1_ref: (E, F)    resident across grid steps (constant index_map)
    # b1_ref: (1, F)
    # w2_ref: (F, O)    resident across grid steps
    # b2_ref: (1, O)
    # o_ref : (tm, O)
    h = jnp.dot(x_ref[...], w1_ref[...], preferred_element_type=jnp.float32)
    h = h + b1_ref[...].astype(jnp.float32)
    # TODO(synk): PyTorch nn.GELU() defaults to the exact erf form; the tanh
    # approximation is used here for guaranteed Mosaic lowering (|diff| ~1e-3).
    h = jax.nn.gelu(h, approximate=True)
    # Cast back to weight dtype so the 2nd matmul is a single-pass MXU matmul
    # for bf16 models (not a silent multi-pass f32 one); accumulate stays f32.
    h = h.astype(w2_ref.dtype)
    o = jnp.dot(h, w2_ref[...], preferred_element_type=jnp.float32)
    o_ref[...] = (o + b2_ref[...].astype(jnp.float32)).astype(o_ref.dtype)


def _mlp_kernel_ftiled(x_ref, w1_ref, b1_ref, w2_ref, b2_ref, o_ref, acc_ref):
    # Grid: (row tiles, F tiles); the reduction over mlp_dim (F) is innermost.
    f = pl.program_id(1)

    @pl.when(f == 0)
    def _():
        acc_ref[...] = jnp.zeros_like(acc_ref)

    h = jnp.dot(x_ref[...], w1_ref[...], preferred_element_type=jnp.float32)
    h = h + b1_ref[...].astype(jnp.float32)
    h = jax.nn.gelu(h, approximate=True)          # TODO(synk): erf vs tanh (see above)
    h = h.astype(w2_ref.dtype)
    acc_ref[...] += jnp.dot(h, w2_ref[...], preferred_element_type=jnp.float32)

    @pl.when(f == pl.num_programs(1) - 1)
    def _():
        o_ref[...] = (acc_ref[...] + b2_ref[...].astype(jnp.float32)).astype(o_ref.dtype)


def mlp_block(x, w1, b1, w2, b2, *, block_m: int = 256, block_f=None,
              resident_budget_bytes: int = 24 * 1024 * 1024):
    """x: (..., E); w1: (E, F); b1: (F,); w2: (F, O); b2: (O,). Returns (..., O)."""
    E = x.shape[-1]
    F = w1.shape[1]
    O = w2.shape[1]
    assert w1.shape == (E, F) and b1.shape == (F,)
    assert w2.shape == (F, O) and b2.shape == (O,)

    leading = x.shape[:-1]
    x2 = x.reshape(-1, E)
    M = x2.shape[0]

    # Pad only when M < 8 (minimum f32 sublane tile). Large ragged M is handled
    # by a cdiv grid + masked partial last tile -- no extra HBM copy of x.
    Mp = M
    if M < 8:
        Mp = 8
        x2 = jnp.pad(x2, ((0, Mp - M), (0, 0)))

    tm = _round_up(min(block_m, _round_up(Mp, 8)), 8)   # row tile, multiple of 8
    grid_m = (Mp + tm - 1) // tm

    b1_2d = b1.reshape(1, F)
    b2_2d = b2.reshape(1, O)

    x_bytes = x.dtype.itemsize
    w_bytes = w1.dtype.itemsize

    cost = pl.CostEstimate(
        flops=2 * M * (E * F + F * O),
        transcendentals=M * F,                      # tanh inside GELU
        bytes_accessed=(M * E + M * O) * x_bytes + (E * F + F * O + F + O) * w_bytes,
    )

    # Footprint of the fully fused path: resident weights + f32 hidden tile.
    resident_bytes = (E * F + F * O) * w_bytes + tm * F * 4
    use_f_tiling = (block_f is not None) or (resident_bytes > resident_budget_bytes)

    if not use_f_tiling:
        vmem_est = (2 * tm * (E + O) * x_bytes                 # dbl-buffered x / out tiles
                    + 2 * (E * F + F * O + F + O) * w_bytes    # weights + biases
                    + tm * F * (4 + w_bytes)                   # hidden tile (f32 + cast copy)
                    + tm * O * 4)                              # f32 pre-store output
        out = pl.pallas_call(
            _mlp_kernel_fused,
            out_shape=jax.ShapeDtypeStruct((Mp, O), x.dtype),
            grid=(grid_m,),
            in_specs=[
                pl.BlockSpec((tm, E), lambda i: (i, 0)),   # x row tile
                pl.BlockSpec((E, F), lambda i: (0, 0)),    # W1 (resident)
                pl.BlockSpec((1, F), lambda i: (0, 0)),    # b1 (resident)
                pl.BlockSpec((F, O), lambda i: (0, 0)),    # W2 (resident)
                pl.BlockSpec((1, O), lambda i: (0, 0)),    # b2 (resident)
            ],
            out_specs=pl.BlockSpec((tm, O), lambda i: (i, 0)),
            compiler_params=pltpu.CompilerParams(
                dimension_semantics=("parallel",),
                vmem_limit_bytes=int(min(128 * 1024 * 1024,
                                         max(16 * 1024 * 1024, 2 * vmem_est))),
            ),
            cost_estimate=cost,
        )(x2, w1, b1_2d, w2, b2_2d)
    else:
        if block_f is not None:
            tf = int(block_f)
        else:
            tf = next((c for c in (2048, 1024, 512, 256, 128) if F % c == 0), F)
        assert F % tf == 0, f"block_f={tf} must divide mlp_dim={F}"
        grid_f = F // tf

        vmem_est = (2 * tm * (E + O) * x_bytes                       # x / out tiles
                    + 2 * (E * tf + tf * O + tf + O) * w_bytes       # W1/W2/bias tiles
                    + tm * tf * (4 + w_bytes)                        # hidden F-tile
                    + tm * O * 4)                                    # f32 accumulator
        out = pl.pallas_call(
            _mlp_kernel_ftiled,
            out_shape=jax.ShapeDtypeStruct((Mp, O), x.dtype),
            grid=(grid_m, grid_f),
            in_specs=[
                pl.BlockSpec((tm, E), lambda i, f: (i, 0)),   # x row tile (resident over f)
                pl.BlockSpec((E, tf), lambda i, f: (0, f)),   # W1 F-tile
                pl.BlockSpec((1, tf), lambda i, f: (0, f)),   # b1 F-tile
                pl.BlockSpec((tf, O), lambda i, f: (f, 0)),   # W2 F-tile
                pl.BlockSpec((1, O), lambda i, f: (0, 0)),    # b2 (resident)
            ],
            out_specs=pl.BlockSpec((tm, O), lambda i, f: (i, 0)),
            scratch_shapes=[pltpu.VMEM((tm, O), jnp.float32)],
            compiler_params=pltpu.CompilerParams(
                dimension_semantics=("parallel", "arbitrary"),
                vmem_limit_bytes=int(min(128 * 1024 * 1024,
                                         max(16 * 1024 * 1024, 2 * vmem_est))),
            ),
            cost_estimate=cost,
        )(x2, w1, b1_2d, w2, b2_2d)

    if Mp != M:
        out = out[:M]
    return out.reshape(*leading, O)


def _reference(x, w1, b1, w2, b2):
    # Pure-JAX reference with identical math (tanh-approx GELU).
    h = jax.nn.gelu(x @ w1 + b1, approximate=True)
    return h @ w2 + b2


if __name__ == "__main__":
    key = jax.random.PRNGKey(0)
    kx, k1, kb1, k2, kb2 = jax.random.split(key, 5)

    batch, seq = 2, 8
    embedding_dim, mlp_dim, out_dim = 128, 256, 128   # lane-dense feature dims

    x = jax.random.normal(kx, (batch, seq, embedding_dim), jnp.float32)
    w1 = jax.random.normal(k1, (embedding_dim, mlp_dim), jnp.float32) * (
        1.0 / jnp.sqrt(embedding_dim))
    b1 = jax.random.normal(kb1, (mlp_dim,), jnp.float32) * 0.01
    w2 = jax.random.normal(k2, (mlp_dim, out_dim), jnp.float32) * (
        1.0 / jnp.sqrt(mlp_dim))
    b2 = jax.random.normal(kb2, (out_dim,), jnp.float32) * 0.01

    y_ref = _reference(x, w1, b1, w2, b2)

    # 1) Fully fused path (weights resident in VMEM across row tiles).
    y = mlp_block(x, w1, b1, w2, b2)
    jax.block_until_ready(y)
    assert y.shape == (batch, seq, out_dim), y.shape
    assert jnp.allclose(y, y_ref, rtol=1e-4, atol=1e-4), (
        float(jnp.max(jnp.abs(y - y_ref))))

    # 2) F-tiled accumulator path (bounded VMEM; the path large mlp_dim / v7x
    #    takes automatically), forced here at small shapes for coverage.
    y_ft = mlp_block(x, w1, b1, w2, b2, block_f=128)
    jax.block_until_ready(y_ft)
    assert jnp.allclose(y_ft, y_ref, rtol=1e-4, atol=1e-4), (
        float(jnp.max(jnp.abs(y_ft - y_ref))))

    # 3) Ragged row count (M not a multiple of the row tile): masked partial
    #    last tile instead of a host-side pad of x.
    xr = jax.random.normal(kx, (2, 10, embedding_dim), jnp.float32)
    yr = mlp_block(xr, w1, b1, w2, b2, block_m=8)
    jax.block_until_ready(yr)
    yr_ref = _reference(xr, w1, b1, w2, b2)
    assert yr.shape == (2, 10, out_dim), yr.shape
    assert jnp.allclose(yr, yr_ref, rtol=1e-4, atol=1e-4), (
        float(jnp.max(jnp.abs(yr - yr_ref))))

    print("KERNEL_OK")
</pallas_src>

<mosaic_0001>
module attributes {stable_mosaic.version = 11 : i64} {
  func.func @_mlp_kernel_fused(%arg0: i32, %arg1: memref<16x128xf32, #tpu.memory_space<vmem>>, %arg2: memref<128x256xf32, #tpu.memory_space<vmem>>, %arg3: memref<1x256xf32, #tpu.memory_space<vmem>>, %arg4: memref<256x128xf32, #tpu.memory_space<vmem>>, %arg5: memref<1x128xf32, #tpu.memory_space<vmem>>, %arg6: memref<16x128xf32, #tpu.memory_space<vmem>>) attributes {dimension_semantics = [#tpu.dimension_semantics<parallel>], iteration_bounds = array<i64: 1>, scalar_prefetch = 0 : i64, scratch_operands = 0 : i64, tpu.core_type = #tpu.core_type<tc>, window_params = [{transform_indices = @transform_0, window_bounds = array<i64: 16, 128>}, {pipeline_mode = #tpu.pipeline_mode<synchronous>, transform_indices = @transform_1, window_bounds = array<i64: 128, 256>}, {pipeline_mode = #tpu.pipeline_mode<synchronous>, transform_indices = @transform_2, window_bounds = array<i64: 1, 256>}, {pipeline_mode = #tpu.pipeline_mode<synchronous>, transform_indices = @transform_3, window_bounds = array<i64: 256, 128>}, {pipeline_mode = #tpu.pipeline_mode<synchronous>, transform_indices = @transform_4, window_bounds = array<i64: 1, 128>}, {transform_indices = @transform_5, window_bounds = array<i64: 16, 128>}]} {
    %c0 = arith.constant 0 : index
    %c0_0 = arith.constant 0 : index
    %0 = vector.load %arg1[%c0, %c0_0] : memref<16x128xf32, #tpu.memory_space<vmem>>, vector<16x128xf32>
    %c0_1 = arith.constant 0 : index
    %c0_2 = arith.constant 0 : index
    %1 = vector.load %arg2[%c0_1, %c0_2] : memref<128x256xf32, #tpu.memory_space<vmem>>, vector<128x256xf32>
    %cst = arith.constant dense<0.000000e+00> : vector<16x256xf32>
    %2 = tpu.matmul %0, %1, %cst {dimension_numbers = #tpu.dot_dimension_numbers<[1], [0], [0], [1], [0, 0, 1, 1], [], []>} : vector<16x128xf32>, vector<128x256xf32>, vector<16x256xf32> -> vector<16x256xf32>
    %c0_3 = arith.constant 0 : index
    %c0_4 = arith.constant 0 : index
    %3 = vector.load %arg3[%c0_3, %c0_4] : memref<1x256xf32, #tpu.memory_space<vmem>>, vector<1x256xf32>
    %4 = vector.broadcast %3 : vector<1x256xf32> to vector<16x256xf32>
    %5 = arith.addf %2, %4 : vector<16x256xf32>
    %6 = arith.mulf %5, %5 : vector<16x256xf32>
    %7 = arith.mulf %5, %6 : vector<16x256xf32>
    %cst_5 = arith.constant 4.471500e-02 : f32
    %8 = vector.broadcast %cst_5 : f32 to vector<16x256xf32>
    %9 = arith.mulf %8, %7 : vector<16x256xf32>
    %10 = arith.addf %5, %9 : vector<16x256xf32>
    %cst_6 = arith.constant 0.797884583 : f32
    %11 = vector.broadcast %cst_6 : f32 to vector<16x256xf32>
    %12 = arith.mulf %11, %10 : vector<16x256xf32>
    %13 = math.tanh %12 : vector<16x256xf32>
    %cst_7 = arith.constant 1.000000e+00 : f32
    %14 = vector.broadcast %cst_7 : f32 to vector<16x256xf32>
    %15 = arith.addf %14, %13 : vector<16x256xf32>
    %cst_8 = arith.constant 5.000000e-01 : f32
    %16 = vector.broadcast %cst_8 : f32 to vector<16x256xf32>
    %17 = arith.mulf %16, %15 : vector<16x256xf32>
    %18 = arith.mulf %5, %17 : vector<16x256xf32>
    %c0_9 = arith.constant 0 : index
    %c0_10 = arith.constant 0 : index
    %19 = vector.load %arg4[%c0_9, %c0_10] : memref<256x128xf32, #tpu.memory_space<vmem>>, vector<256x128xf32>
    %cst_11 = arith.constant dense<0.000000e+00> : vector<16x128xf32>
    %20 = tpu.matmul %18, %19, %cst_11 {dimension_numbers = #tpu.dot_dimension_numbers<[1], [0], [0], [1], [0, 0, 1, 1], [], []>} : vector<16x256xf32>, vector<256x128xf32>, vector<16x128xf32> -> vector<16x128xf32>
    %c0_12 = arith.constant 0 : index
    %c0_13 = arith.constant 0 : index
    %21 = vector.load %arg5[%c0_12, %c0_13] : memref<1x128xf32, #tpu.memory_space<vmem>>, vector<1x128xf32>
    %22 = vector.broadcast %21 : vector<1x128xf32> to vector<16x128xf32>
    %23 = arith.addf %20, %22 : vector<16x128xf32>
    %c0_14 = arith.constant 0 : index
    %c0_15 = arith.constant 0 : index
    %24 = vector.load %arg6[%c0_14, %c0_15] : memref<16x128xf32, #tpu.memory_space<vmem>>, vector<16x128xf32>
    tpu.vector_store %arg6[%c0_14, %c0_15], %23 {strides = array<i32>} : memref<16x128xf32, #tpu.memory_space<vmem>>, vector<16x128xf32>,
    return
  }
  func.func @transform_0(%arg0: i32) -> (i32, i32) {
    %c0_i32 = arith.constant 0 : i32
    %c0_i32_0 = arith.constant 0 : i32
    return %arg0, %c0_i32 : i32, i32
  }
  func.func @transform_1(%arg0: i32) -> (i32, i32) {
    %c0_i32 = arith.constant 0 : i32
    %c0_i32_0 = arith.constant 0 : i32
    %c0_i32_1 = arith.constant 0 : i32
    return %c0_i32, %c0_i32_0 : i32, i32
  }
  func.func @transform_2(%arg0: i32) -> (i32, i32) {
    %c0_i32 = arith.constant 0 : i32
    %c0_i32_0 = arith.constant 0 : i32
    %c0_i32_1 = arith.constant 0 : i32
    return %c0_i32, %c0_i32_0 : i32, i32
  }
  func.func @transform_3(%arg0: i32) -> (i32, i32) {
    %c0_i32 = arith.constant 0 : i32
    %c0_i32_0 = arith.constant 0 : i32
    %c0_i32_1 = arith.constant 0 : i32
    return %c0_i32, %c0_i32_0 : i32, i32
  }
  func.func @transform_4(%arg0: i32) -> (i32, i32) {
    %c0_i32 = arith.constant 0 : i32
    %c0_i32_0 = arith.constant 0 : i32
    %c0_i32_1 = arith.constant 0 : i32
    return %c0_i32, %c0_i32_0 : i32, i32
  }
  func.func @transform_5(%arg0: i32) -> (i32, i32) {
    %c0_i32 = arith.constant 0 : i32
    %c0_i32_0 = arith.constant 0 : i32
    return %arg0, %c0_i32 : i32, i32
  }
}

</mosaic_0001>

<bundles_post_ra>
// kernel: tpu_custom_call.1
= control target key start
LH: loop header
LB: loop body
LE: loop exit
PB: predicated region body
PF: predicated region fallthrough
CT: control target
= control target key end

     0   :  { %10 = vsyncpa [#allocation3], 0  ;;  %s673_s0 = inlined_call_operand.hbm [shape: f32[16,128], index: 0, kind: input, shape index: {}]   ;;  %s674_s1 = inlined_call_operand.hbm [shape: f32[128,256], index: 1, kind: input, shape index: {}]   ;;  %s675_s2 = inlined_call_operand.vmem [shape: f32[1,256], index: 2, kind: input, shape index: {}]   ;;  %s676_s3 = inlined_call_operand.hbm [shape: f32[256,128], index: 3, kind: input, shape index: {}]   ;;  %s677_s4 = inlined_call_operand.vmem [shape: f32[1,128], index: 4, kind: input, shape index: {}]   ;;  %s678_s5 = inlined_call_operand.hbm [shape: f32[16,128], index: 5, kind: output, shape index: {}]  }
   0x1   :  { %11 = vsyncpa [#allocation6], 0 }
   0x2   :  { %12 = vsyncpa [#allocation4], 0  ;;  %s569_s18 = smov [#allocation5]   ;;  %s475_s22 = scalar_lea.hbm %s674_s1, 4096 }
   0x3   :  { %s30_s19 = sshll.u32 %s569_s18, 4  ;;  %p476_p0 = scmp.ne.s32.totalorder %s674_s1, %s475_s22  ;;  %s31_s19 = int_to_ptr.vmem [resolvable:$true] %s30_s19 }
   0x4   :  { %p479_p1 = scmp.lt.u32.totalorder %s475_s22, %s674_s1 }
   0x6   :  { %p481_p2 = pnand %p479_p1, %p476_p0 }
   0x8   :  { %484 = shalt.err (!%p481_p2)
}
   0x9   :  { %s485_s27 = scalar_lea.vmem %s31_s19, 4096  ;;  %p490_p4 = scmp.lt.s32.totalorder %s31_s19, %s31_s19 }
   0xa   :  { %p486_p3 = scmp.ne.s32.totalorder %s31_s19, %s485_s27  ;;  %p491_p5 = scmp.lt.s32.totalorder %s485_s27, %s485_s27 }
   0xc   :  { %p492_p6 = por %p491_p5, %p490_p4 }
   0xe   :  { %p493_p7 = pnand %p492_p6, %p486_p3 }
  0x10   :  { %496 = shalt.err (!%p493_p7)
}
  0x11   :  { %s570_s28 = smov 256   ;;  %s571_s29 = smov 16  }
  0x12   :  { %36 = dma.hbm_to_vmem [thread:$0]  %s674_s1, 4096, %s31_s19, [#allocation6], %s570_s28, %s570_s28, %s571_s29  }
  0x13   :  { %s572_s7 = smov [#allocation2]   ;;  %s497_s11 = scalar_lea.hbm %s673_s0, 256 }
  0x14   :  { %s18_s8 = sshll.u32 %s572_s7, 4  ;;  %p498_p8 = scmp.ne.s32.totalorder %s673_s0, %s497_s11  ;;  %s19_s8 = int_to_ptr.vmem [resolvable:$true] %s18_s8 }
  0x15   :  { %p501_p9 = scmp.lt.u32.totalorder %s497_s11, %s673_s0 }
  0x17   :  { %p503_p10 = pnand %p501_p9, %p498_p8 }
  0x19   :  { %506 = shalt.err (!%p503_p10)
}
  0x1a   :  { %s507_s16 = scalar_lea.vmem %s19_s8, 256  ;;  %p512_p12 = scmp.lt.s32.totalorder %s19_s8, %s19_s8 }
  0x1b   :  { %p508_p11 = scmp.ne.s32.totalorder %s19_s8, %s507_s16  ;;  %p513_p13 = scmp.lt.s32.totalorder %s507_s16, %s507_s16 }
  0x1d   :  { %p514_p0 = por %p513_p13, %p512_p12 }
  0x1f   :  { %p515_p1 = pnand %p514_p0, %p508_p11 }
  0x21   :  { %518 = shalt.err (!%p515_p1)
}
  0x22   :  { %s573_s1 = smov 128   ;;  %s574_s17 = smov 8  }
  0x23   :  { %24 = dma.hbm_to_vmem [thread:$0]  %s673_s0, 256, %s19_s8, [#allocation3], %s573_s1, %s573_s1, %s574_s17  }
  0x24   :  { %s575_s20 = smov [#allocation7]   ;;  %s519_s24 = scalar_lea.hbm %s676_s3, 4096 }
  0x25   :  { %s44_s21 = sshll.u32 %s575_s20, 4  ;;  %p520_p2 = scmp.ne.s32.totalorder %s676_s3, %s519_s24  ;;  %s45_s21 = int_to_ptr.vmem [resolvable:$true] %s44_s21 }
  0x26   :  { %p523_p3 = scmp.lt.u32.totalorder %s519_s24, %s676_s3 }
  0x28   :  { %p525_p4 = pnand %p523_p3, %p520_p2 }
  0x2a   :  { %528 = shalt.err (!%p525_p4)
}
  0x2b   :  { %s529_s29 = scalar_lea.vmem %s45_s21, 4096  ;;  %p534_p6 = scmp.lt.s32.totalorder %s45_s21, %s45_s21 }
  0x2c   :  { %p530_p5 = scmp.ne.s32.totalorder %s45_s21, %s529_s29  ;;  %p535_p7 = scmp.lt.s32.totalorder %s529_s29, %s529_s29 }
  0x2e   :  { %p536_p8 = por %p535_p7, %p534_p6 }
  0x30   :  { %p537_p9 = pnand %p536_p8, %p530_p5 }
  0x32   :  { %540 = shalt.err (!%p537_p9)
}
  0x33   :  { %50 = dma.hbm_to_vmem [thread:$0]  %s676_s3, 4096, %s45_s21, [#allocation6], %s573_s1, %s573_s1, %s574_s17  }
  0x34   :  { %563 = dma.done.wait [#allocation3], 256  }
  0x35   :  { %564 = vsyncadd [#allocation3], 4294967040 }
  0x36   :  { %565 = dma.done.wait [#allocation6], 8192  }
  0x37   :  { %566 = vsyncadd [#allocation6], 4294959104  ;;  %v576_v0 = vmov 0.0   ;;  %v65_v1 = vld [vmem:[#allocation5 + $0x8] sm:$0xff]  ;;  %v67_v2 = vld [vmem:[#allocation5 + $0x18] sm:$0xff]  ;;  %s577_s8 = smov [#allocation8]  }
  0x38   :  { %172 = vmatprep.mubr.f32.mxu0 %v576_v0  ;;  %v64_v3 = vld [vmem:[#allocation5] sm:$0xff]  ;;  %v394_v4 = vpack.c.bf16 %v67_v2, %v65_v1  ;;  %v66_v5 = vld [vmem:[#allocation5 + $0x10] sm:$0xff]  ;;  %v69_v6 = vld [vmem:[#allocation5 + $0x28] sm:$0xff]  ;;  %s342_s9 = sshll.u32 %s577_s8, 4  ;;  %s343_s9 = int_to_ptr.vmem [resolvable:$true] %s342_s9 }
  0x39   :  { %v71_v7 = vld [vmem:[#allocation5 + $0x38] sm:$0xff]  ;;  %v396_v8 = vpack.c.bf16 %v66_v5, %v64_v3  ;;  %v68_v10 = vld [vmem:[#allocation5 + $0x20] sm:$0xff]  ;;  %v70_v11 = vld [vmem:[#allocation5 + $0x30] sm:$0xff]  ;;  %s541_s10 = scalar_lea.vmem %s343_s9, 256  ;;  %p546_p11 = scmp.lt.s32.totalorder %s343_s9, %s343_s9 }
  0x3a   :  { %v398_v9 = vpack.c.bf16 %v71_v7, %v69_v6  ;;  %v73_v12 = vld [vmem:[#allocation5 + $0x48] sm:$0xff]  ;;  %395 = vmatprep.subr.bf16.mxu0 %v394_v4  ;;  %v75_v13 = vld [vmem:[#allocation5 + $0x58] sm:$0xff]  ;;  %v400_v14 = vpack.c.bf16 %v70_v11, %v68_v10  ;;  %v72_v16 = vld [vmem:[#allocation5 + $0x40] sm:$0xff]  ;;  %p542_p10 = scmp.ne.s32.totalorder %s343_s9, %s541_s10  ;;  %p547_p12 = scmp.lt.s32.totalorder %s541_s10, %s541_s10 }
  0x3b   :  { %397 = vmatpush1.bf16.msra.mxu0 %v396_v8  ;;  %v402_v15 = vpack.c.bf16 %v75_v13, %v73_v12  ;;  %v74_v17 = vld [vmem:[#allocation5 + $0x50] sm:$0xff]  ;;  %v77_v18 = vld [vmem:[#allocation5 + $0x68] sm:$0xff]  ;;  %v79_v19 = vld [vmem:[#allocation5 + $0x78] sm:$0xff] }
  0x3c   :  { %399 = vmatprep.subr.bf16.mxu0 %v398_v9  ;;  %v404_v20 = vpack.c.bf16 %v74_v17, %v72_v16  ;;  %v406_v21 = vpack.c.bf16 %v79_v19, %v77_v18  ;;  %v76_v22 = vld [vmem:[#allocation5 + $0x60] sm:$0xff]  ;;  %v78_v23 = vld [vmem:[#allocation5 + $0x70] sm:$0xff]  ;;  %v81_v24 = vld [vmem:[#allocation5 + $0x88] sm:$0xff]  ;;  %p548_p13 = por %p547_p12, %p546_p11 }
  0x3d   :  { %v83_v25 = vld [vmem:[#allocation5 + $0x98] sm:$0xff]  ;;  %v408_v26 = vpack.c.bf16 %v78_v23, %v76_v22  ;;  %v80_v28 = vld [vmem:[#allocation5 + $0x80] sm:$0xff]  ;;  %v82_v29 = vld [vmem:[#allocation5 + $0x90] sm:$0xff] }
  0x3e   :  { %v410_v27 = vpack.c.bf16 %v83_v25, %v81_v24  ;;  %v85_v30 = vld [vmem:[#allocation5 + $0xa8] sm:$0xff]  ;;  %v87_v31 = vld [vmem:[#allocation5 + $0xb8] sm:$0xff]  ;;  %v412_v32 = vpack.c.bf16 %v82_v29, %v80_v28  ;;  %v84_v34 = vld [vmem:[#allocation5 + $0xa0] sm:$0xff]  ;;  %p549_p0 = pnand %p548_p13, %p542_p10 }
  0x3f   :  { %401 = vmatpush1.bf16.msra.mxu0 %v400_v14  ;;  %v414_v33 = vpack.c.bf16 %v87_v31, %v85_v30  ;;  %v86_v35 = vld [vmem:[#allocation5 + $0xb0] sm:$0xff]  ;;  %v89_v36 = vld [vmem:[#allocation5 + $0xc8] sm:$0xff]  ;;  %v91_v37 = vld [vmem:[#allocation5 + $0xd8] sm:$0xff] }
  0x40   :  { %403 = vmatprep.subr.bf16.mxu0 %v402_v15  ;;  %v416_v38 = vpack.c.bf16 %v86_v35, %v84_v34  ;;  %v418_v39 = vpack.c.bf16 %v91_v37, %v89_v36  ;;  %v88_v40 = vld [vmem:[#allocation5 + $0xc0] sm:$0xff]  ;;  %v90_v41 = vld [vmem:[#allocation5 + $0xd0] sm:$0xff]  ;;  %v93_v42 = vld [vmem:[#allocation5 + $0xe8] sm:$0xff]  ;;  %v98_v35 = vlaneseq }
  0x41   :  { %v95_v43 = vld [vmem:[#allocation5 + $0xf8] sm:$0xff]  ;;  %v420_v44 = vpack.c.bf16 %v90_v41, %v88_v40  ;;  %v92_v46 = vld [vmem:[#allocation5 + $0xe0] sm:$0xff]  ;;  %v94_v47 = vld [vmem:[#allocation5 + $0xf0] sm:$0xff] }
  0x42   :  { %v422_v45 = vpack.c.bf16 %v95_v43, %v93_v42  ;;  %v424_v48 = vpack.c.bf16 %v94_v47, %v92_v46  ;;  %v62_v49 = vld [vmem:[#allocation2] sm:$0xff]  ;;  %v63_v50 = vld [vmem:[#allocation2 + $0x8] sm:$0xff]  ;;  %v237_v51 = vld [vmem:[#allocation7 + $0x80] sm:$0xff]  ;;  %v99_v36 = vshrl.u32 %v98_v35, 7 }
  0x43   :  { %405 = vmatpush1.bf16.msra.mxu0 %v404_v20  ;;  %v238_v52 = vld [vmem:[#allocation7 + $0x88] sm:$0xff]  ;;  %v221_v54 = vld [vmem:[#allocation7] sm:$0xff]  ;;  %v239_v57 = vld [vmem:[#allocation7 + $0x90] sm:$0xff] }
  0x44   :  { %407 = vmatprep.subr.bf16.mxu0 %v406_v21  ;;  %v426_v53 = vpack.c.bf16 %v238_v52, %v237_v51  ;;  %v222_v55 = vld [vmem:[#allocation7 + $0x8] sm:$0xff]  ;;  %v240_v58 = vld [vmem:[#allocation7 + $0x98] sm:$0xff]  ;;  %v223_v60 = vld [vmem:[#allocation7 + $0x10] sm:$0xff]  ;;  %v100_v37 = vsub.s32 0, %v99_v36 }
  0x45   :  { %v428_v56 = vpack.c.bf16 %v222_v55, %v221_v54  ;;  %v430_v59 = vpack.c.bf16 %v240_v58, %v239_v57  ;;  %v224_v61 = vld [vmem:[#allocation7 + $0x18] sm:$0xff]  ;;  %v241_v63 = vld [vmem:[#allocation7 + $0xa0] sm:$0xff]  ;;  %v226_v3 = vld [vmem:[#allocation7 + $0x28] sm:$0xff] }
  0x46   :  { %427 = vmatprep.subr.bf16.mxu1 %v426_v53  ;;  %v432_v62 = vpack.c.bf16 %v224_v61, %v223_v60  ;;  %v225_v2 = vld [vmem:[#allocation7 + $0x20] sm:$0xff]  ;;  %v243_v5 = vld [vmem:[#allocation7 + $0xb0] sm:$0xff]  ;;  %v244_v6 = vld [vmem:[#allocation7 + $0xb8] sm:$0xff] }
  0x47   :  { %409 = vmatpush1.bf16.msra.mxu0 %v408_v26  ;;  %429 = vmatpush3.bf16.msra.mxu1 %v428_v56  ;;  %v436_v4 = vpack.c.bf16 %v226_v3, %v225_v2  ;;  %v438_v7 = vpack.c.bf16 %v244_v6, %v243_v5  ;;  %v227_v8 = vld [vmem:[#allocation7 + $0x30] sm:$0xff]  ;;  %v228_v9 = vld [vmem:[#allocation7 + $0x38] sm:$0xff]  ;;  %v245_v11 = vld [vmem:[#allocation7 + $0xc0] sm:$0xff] }
  0x48   :  { %411 = vmatprep.subr.bf16.mxu0 %v410_v27  ;;  %431 = vmatprep.subr.bf16.mxu1 %v430_v59  ;;  %v440_v10 = vpack.c.bf16 %v228_v9, %v227_v8  ;;  %v246_v12 = vld [vmem:[#allocation7 + $0xc8] sm:$0xff]  ;;  %v229_v14 = vld [vmem:[#allocation7 + $0x40] sm:$0xff]  ;;  %v247_v17 = vld [vmem:[#allocation7 + $0xd0] sm:$0xff] }
  0x49   :  { %v442_v13 = vpack.c.bf16 %v246_v12, %v245_v11  ;;  %v230_v15 = vld [vmem:[#allocation7 + $0x48] sm:$0xff]  ;;  %v248_v18 = vld [vmem:[#allocation7 + $0xd8] sm:$0xff]  ;;  %v231_v19 = vld [vmem:[#allocation7 + $0x50] sm:$0xff] }
  0x4a   :  { %v444_v16 = vpack.c.bf16 %v230_v15, %v229_v14  ;;  %v446_v20 = vpack.c.bf16 %v248_v18, %v247_v17  ;;  %v232_v21 = vld [vmem:[#allocation7 + $0x58] sm:$0xff]  ;;  %v249_v22 = vld [vmem:[#allocation7 + $0xe0] sm:$0xff]  ;;  %v250_v23 = vld [vmem:[#allocation7 + $0xe8] sm:$0xff] }
  0x4b   :  { %413 = vmatpush1.bf16.msra.mxu0 %v412_v32  ;;  %433 = vmatpush3.bf16.msra.mxu1 %v432_v62  ;;  %v448_v24 = vpack.c.bf16 %v232_v21, %v231_v19  ;;  %v450_v25 = vpack.c.bf16 %v250_v23, %v249_v22  ;;  %v233_v26 = vld [vmem:[#allocation7 + $0x60] sm:$0xff]  ;;  %v234_v27 = vld [vmem:[#allocation7 + $0x68] sm:$0xff]  ;;  %v251_v28 = vld [vmem:[#allocation7 + $0xf0] sm:$0xff] }
  0x4c   :  { %415 = vmatprep.subr.bf16.mxu0 %v414_v33  ;;  %v252_v29 = vld [vmem:[#allocation7 + $0xf8] sm:$0xff]  ;;  %v452_v30 = vpack.c.bf16 %v234_v27, %v233_v26  ;;  %v235_v32 = vld [vmem:[#allocation7 + $0x70] sm:$0xff] }
  0x4d   :  { %v454_v31 = vpack.c.bf16 %v252_v29, %v251_v28  ;;  %v236_v33 = vld [vmem:[#allocation7 + $0x78] sm:$0xff]  ;;  %v355_v23 = vld [vmem:[%s677_s4] ss:$0 sm:$0xff] }
  0x4e   :  { %v456_v34 = vpack.c.bf16 %v236_v33, %v235_v32 }
  0x4f   :  { %417 = vmatpush1.bf16.msra.mxu0 %v416_v38  ;;  %v96_v38 = vld [vmem:[%s675_s2] sm:$0x3] }
  0x50   :  { %419 = vmatprep.subr.bf16.mxu0 %v418_v39  ;;  %v104_v39 = vsub.s32 1, %v99_v36  ;;  %v101_v40 = vrot.slane %v96_v38, %v100_v37 }
  0x52   :  { %v105_v41 = vrot.slane %v96_v38, %v104_v39 }
  0x53   :  { %421 = vmatpush1.bf16.msra.mxu0 %v420_v44 }
  0x54   :  { %423 = vmatprep.subr.bf16.mxu0 %v422_v45 }
  0x57   :  { %425 = vmatpush1.bf16.msra.mxu0 %v424_v48 }
  0x5a   :  { %173 = vmatmul.mubr.f32.vlgmr.msra.gmra.mrb[0].mxu0 %v62_v49 }
  0x5b   :  { %178 = vmatprep.mubr.f32.mxu0 %v576_v0  ;;  %v242_v0 = vld [vmem:[#allocation7 + $0xa8] sm:$0xff] }
  0x5c   :  { %v434_v1 = vpack.c.bf16 %v242_v0, %v241_v63 }
  0x5e   :  { %179 = vmatmul.mubr.f32.gmra.mrb[2].mxu0 %v63_v50  ;;  %435 = vmatprep.subr.bf16.mxu1 %v434_v1 }
  0x5f   :  { %437 = vmatpush3.bf16.msra.mxu1 %v436_v4 }
  0x60   :  { %439 = vmatprep.subr.bf16.mxu1 %v438_v7 }
  0x63   :  { %441 = vmatpush3.bf16.msra.mxu1 %v440_v10 }
  0x64   :  { %443 = vmatprep.subr.bf16.mxu1 %v442_v13 }
  0x67   :  { %445 = vmatpush3.bf16.msra.mxu1 %v444_v16 }
  0x68   :  { %447 = vmatprep.subr.bf16.mxu1 %v446_v20 }
  0x6b   :  { %449 = vmatpush3.bf16.msra.mxu1 %v448_v24 }
  0x6c   :  { %451 = vmatprep.subr.bf16.mxu1 %v450_v25 }
  0x6f   :  { %453 = vmatpush3.bf16.msra.mxu1 %v452_v30 }
  0x70   :  { %455 = vmatprep.subr.bf16.mxu1 %v454_v31 }
  0x73   :  { %457 = vmatpush3.bf16.msra.mxu1 %v456_v34 }
 0x12d   :  { %v174_v42 = vpop.f32.mrb[0].mxu0 }
 0x12e   :  { %v175_v43 = vadd.f32 %v174_v42, %v101_v40  ;;  %v176_v44 = vpop.f32.mrb[1].mxu0 }
 0x12f   :  { %v177_v45 = vadd.f32 %v176_v44, %v105_v41 }
 0x130   :  { %v185_v46 = vmul.f32 %v175_v43, %v175_v43 }
 0x131   :  { %v186_v47 = vmul.f32 %v177_v45, %v177_v45  ;;  %v180_v48 = vpop.f32.mrb[2].mxu0 }
 0x132   :  { %v189_v49 = vmul.f32 %v185_v46, %v175_v43  ;;  %v181_v50 = vadd.f32 %v180_v48, %v101_v40  ;;  %v182_v51 = vpop.f32.mrb[3].mxu0 }
 0x133   :  { %v190_v52 = vmul.f32 %v186_v47, %v177_v45  ;;  %v183_v53 = vadd.f32 %v182_v51, %v105_v41 }
 0x134   :  { %v193_v54 = vmul.f32 0.044715, %v189_v49  ;;  %v187_v55 = vmul.f32 %v181_v50, %v181_v50 }
 0x135   :  { %v188_v56 = vmul.f32 %v183_v53, %v183_v53  ;;  %v194_v57 = vmul.f32 0.044715, %v190_v52 }
 0x136   :  { %v197_v58 = vadd.f32 %v193_v54, %v175_v43  ;;  %v191_v59 = vmul.f32 %v187_v55, %v181_v50 }
 0x137   :  { %v192_v60 = vmul.f32 %v188_v56, %v183_v53  ;;  %v198_v61 = vadd.f32 %v194_v57, %v177_v45 }
 0x138   :  { %v201_v62 = vmul.f32 0.7978846, %v197_v58  ;;  %v195_v63 = vmul.f32 0.044715, %v191_v59 }
 0x139   :  { %v196_v0 = vmul.f32 0.044715, %v192_v60  ;;  %v202_v1 = vmul.f32 0.7978846, %v198_v61 }
 0x13a   :  { %v199_v2 = vadd.f32 %v195_v63, %v181_v50  ;;  %467 = vtanh.f32 %v201_v62 }
 0x13b   :  { %v200_v3 = vadd.f32 %v196_v0, %v183_v53  ;;  %469 = vtanh.f32 %v202_v1 }
 0x13c   :  { %v203_v4 = vmul.f32 0.7978846, %v199_v2 }
 0x13d   :  { %v204_v5 = vmul.f32 0.7978846, %v200_v3 }
 0x13e   :  { %471 = vtanh.f32 %v203_v4 }
 0x13f   :  { %473 = vtanh.f32 %v204_v5 }
 0x144   :  { %v468_v6 = vpop.eup %467 }
 0x145   :  { %v470_v7 = vpop.eup %469  ;;  %v209_v8 = vadd.f32 1.0, %v468_v6 }
 0x146   :  { %v210_v9 = vadd.f32 1.0, %v470_v7 }
 0x147   :  { %v213_v10 = vmul.f32 0.5, %v209_v8 }
 0x148   :  { %v472_v11 = vpop.eup %471  ;;  %v214_v12 = vmul.f32 0.5, %v210_v9 }
 0x149   :  { %v474_v13 = vpop.eup %473  ;;  %v211_v14 = vadd.f32 1.0, %v472_v11  ;;  %v217_v17 = vmul.f32 %v213_v10, %v175_v43 }
 0x14a   :  { %v218_v15 = vmul.f32 %v214_v12, %v177_v45  ;;  %v212_v16 = vadd.f32 1.0, %v474_v13 }
 0x14b   :  { %v215_v18 = vmul.f32 0.5, %v211_v14 }
 0x14c   :  { %324 = vmatprep.mubr.f32.mxu1 %v218_v15  ;;  %v216_v19 = vmul.f32 0.5, %v212_v16 }
 0x14d   :  { %325 = vmatmul.mubr.f32.vlgmr.msra.gmra.mrb[0].mxu1 %v217_v17  ;;  %v219_v21 = vmul.f32 %v215_v18, %v181_v50 }
 0x14e   :  { %v220_v20 = vmul.f32 %v216_v19, %v183_v53 }
 0x150   :  { %329 = vmatprep.mubr.f32.mxu1 %v220_v20 }
 0x151   :  { %330 = vmatmul.mubr.f32.gmra.mrb[2].mxu1 %v219_v21 }
 0x220   :  { %v388_v22 = vpop.f32.mrb[0].mxu1 }
 0x221   :  { %v389_v24 = vpop.f32.mrb[1].mxu1 }
 0x222   :  { %v390_v25 = vadd.f32 %v389_v24, %v388_v22 }
 0x224   :  { %v327_v26 = vadd.f32 %v390_v25, %v355_v23  ;;  %v391_v27 = vpop.f32.mrb[2].mxu1 }
 0x225   :  { %v392_v28 = vpop.f32.mrb[3].mxu1 }
 0x226   :  { %335 = vst [vmem:[#allocation8] sm:$0xff] %v327_v26  ;;  %v393_v29 = vadd.f32 %v392_v28, %v391_v27 }
 0x228   :  { %v332_v30 = vadd.f32 %v393_v29, %v355_v23 }
 0x22a   :  { %336 = vst [vmem:[#allocation8 + $0x8] sm:$0xff] %v332_v30 }
 0x22b   :  { %552 = shalt.err (!%p549_p0)
}
 0x22c   :  { %s553_s12 = scalar_lea.hbm %s678_s5, 256 }
 0x22d   :  { %p554_p1 = scmp.ne.s32.totalorder %s678_s5, %s553_s12  ;;  %p557_p2 = scmp.lt.u32.totalorder %s553_s12, %s678_s5 }
 0x22f   :  { %p559_p3 = pnand %p557_p2, %p554_p1 }
 0x231   :  { %562 = shalt.err (!%p559_p3)
}
 0x232   :  { %348 = dma.vmem_to_hbm [thread:$0]  %s343_s9, 256, %s678_s5, [#allocation4], %s573_s1, %s573_s1, %s574_s17  }
 0x233   :  { %567 = dma.done.wait [#allocation4], 256  }
 0x234   :  { %568 = vsyncadd [#allocation4], 4294967040 }
 0x235   :  { %352 = vsyncpa [#allocation3], 1 }
 0x236   :  { %353 = vsyncpa [#allocation6], 1 }
 0x237   :  { %354 = vsyncpa [#allocation4], 1 }

</bundles_post_ra>
